<compile_context>
chip_gen: v5e
topology: v5e:2x2
jax: 0.10.0
libtpu: 0.0.40
codegen_flags: <defaults>
</compile_context>

<pallas_src>
import functools

import jax
import jax.numpy as jnp
from jax.experimental import pallas as pl
from jax.experimental.pallas import tpu as pltpu

PAD = 128  # lane width: every layer's feature dim is zero-padded to 128


def _fused_mlp_kernel(x_ref, w_ref, ss_ref, o_ref, *, num_layers):
    """Entire MLP in one kernel; the activation stays on-chip between layers.

    x_ref : [BB, 128]      f32  (features zero-padded to 128 lanes)
    w_ref : [L, 128, 128]  bf16 (per-layer weight, zero-padded)
    ss_ref: [L, 2, 128]    f32  (row 0 = folded BN scale, row 1 = folded bias+BN shift)
    o_ref : [BB, 128]      f32  (only column 0 carries the real network output)
    """
    act = x_ref[...]                                         # f32 [BB, 128]
    for l in range(num_layers):                              # static unrolled loop
        z = jnp.dot(act.astype(jnp.bfloat16), w_ref[l],
                    preferred_element_type=jnp.float32)      # MXU, f32 accum
        ss = ss_ref[l]                                       # [2, 128] f32
        z = z * ss[0:1, :] + ss[1:2, :]                      # fused bias + BN (eval)
        if l < num_layers - 1:                               # last layer: no BN/ReLU
            z = jnp.maximum(z, 0.0)
        act = z
    o_ref[...] = act.astype(o_ref.dtype)


def fused_mlp(x, w_stack, ss_stack):
    """Run the whole padded/stacked MLP as a single Pallas call.

    x:        [B, F]            f32
    w_stack:  [L, 128, 128]     bf16
    ss_stack: [L, 2, 128]       f32
    returns:  [B, 1]            f32
    """
    B, F = x.shape
    L = w_stack.shape[0]

    # Pad batch to a sublane multiple (8) and features to 128 lanes.
    B_pad = max(8, ((B + 7) // 8) * 8)
    x_p = jnp.zeros((B_pad, PAD), jnp.float32).at[:B, :F].set(x)

    # Batch grid: tile by 128 rows when possible (shards across 2 TCs on v7x),
    # otherwise one block covering the whole (small) batch.
    block_b = 128 if (B_pad >= 128 and B_pad % 128 == 0) else B_pad
    nb = B_pad // block_b

    flops = 2 * B_pad * PAD * PAD * L
    bytes_accessed = (x_p.size * 4 + w_stack.size * 2 + ss_stack.size * 4
                      + B_pad * PAD * 4)

    out = pl.pallas_call(
        functools.partial(_fused_mlp_kernel, num_layers=L),
        out_shape=jax.ShapeDtypeStruct((B_pad, PAD), jnp.float32),
        grid=(nb,),
        in_specs=[
            pl.BlockSpec((block_b, PAD), lambda i: (i, 0)),
            pl.BlockSpec((L, PAD, PAD), lambda i: (0, 0, 0)),
            pl.BlockSpec((L, 2, PAD), lambda i: (0, 0, 0)),
        ],
        out_specs=pl.BlockSpec((block_b, PAD), lambda i: (i, 0)),
        compiler_params=pltpu.CompilerParams(
            dimension_semantics=("parallel",)),
        cost_estimate=pl.CostEstimate(
            flops=flops, transcendentals=0, bytes_accessed=bytes_accessed),
    )(x_p, w_stack, ss_stack)

    return out[:B, :1]


def init_params(key, input_size, width, num_layers):
    """Synthetic params matching the PyTorch module's shapes (eval mode), with
    BatchNorm running stats + Linear bias pre-folded into (scale, shift).

    Returns a list of (w[F_in, F_out], scale[F_out], shift[F_out]), f32, unpadded.
    The last entry is the final Linear(., 1) with scale=1, shift=bias.
    """
    eps = 1e-5
    layers = []

    sizes = [(input_size, width)]
    current = width
    for _ in range(1, num_layers):
        nxt = max(current // 2, 1)
        sizes.append((current, nxt))
        current = nxt

    for din, dout in sizes:
        key, k1, k2, k3, k4, k5, k6 = jax.random.split(key, 7)
        bound = 1.0 / jnp.sqrt(jnp.float32(din))
        w = jax.random.uniform(k1, (din, dout), jnp.float32, -bound, bound)
        b = jax.random.uniform(k2, (dout,), jnp.float32, -bound, bound)
        gamma = jax.random.uniform(k3, (dout,), jnp.float32, 0.5, 1.5)
        beta = jax.random.uniform(k4, (dout,), jnp.float32, -0.5, 0.5)
        run_mean = jax.random.normal(k5, (dout,), jnp.float32) * 0.1
        run_var = jax.random.uniform(k6, (dout,), jnp.float32, 0.5, 1.5)
        inv_std = 1.0 / jnp.sqrt(run_var + eps)
        scale = gamma * inv_std                      # BN scale
        shift = (b - run_mean) * scale + beta        # folded bias + BN shift
        layers.append((w, scale, shift))

    # Final Linear(current, 1) — no BN, no ReLU, no Dropout.
    key, k1, k2 = jax.random.split(key, 3)
    din = current
    bound = 1.0 / jnp.sqrt(jnp.float32(din))
    w = jax.random.uniform(k1, (din, 1), jnp.float32, -bound, bound)
    b = jax.random.uniform(k2, (1,), jnp.float32, -bound, bound)
    layers.append((w, jnp.ones((1,), jnp.float32), b))
    return layers


def pack_params(layers):
    """Zero-pad every layer to 128x128 and stack into the kernel's operands."""
    L = len(layers)
    w_stack = jnp.zeros((L, PAD, PAD), jnp.float32)
    ss_stack = jnp.zeros((L, 2, PAD), jnp.float32)
    for l, (w, scale, shift) in enumerate(layers):
        din, dout = w.shape
        w_stack = w_stack.at[l, :din, :dout].set(w)
        ss_stack = ss_stack.at[l, 0, :dout].set(scale)
        ss_stack = ss_stack.at[l, 1, :dout].set(shift)
    return w_stack.astype(jnp.bfloat16), ss_stack


def reference_forward(x, layers):
    """Pure-JAX f32 reference (same eval-mode semantics, unpadded)."""
    h = x
    for l, (w, scale, shift) in enumerate(layers):
        h = (h @ w) * scale + shift
        if l < len(layers) - 1:
            h = jnp.maximum(h, 0.0)
    return h


if __name__ == "__main__":
    input_size = 32
    width = 32
    num_layers = 3
    batch = 8

    key = jax.random.PRNGKey(0)
    key, xk = jax.random.split(key)
    x = jax.random.normal(xk, (batch, input_size), dtype=jnp.float32)

    layers = init_params(key, input_size, width, num_layers)
    w_stack, ss_stack = pack_params(layers)

    out = jax.jit(fused_mlp)(x, w_stack, ss_stack)
    out = jax.block_until_ready(out)
    assert out.shape == (batch, 1), out.shape

    # Validate against the pure-JAX f32 reference (loose tol: bf16 MXU inputs).
    ref = reference_forward(x, layers)
    max_err = float(jnp.max(jnp.abs(out - ref)))
    assert jnp.allclose(out, ref, atol=5e-2, rtol=5e-2), f"max_err={max_err}"

    print("KERNEL_OK")
</pallas_src>

<mosaic_0001>
module attributes {stable_mosaic.version = 11 : i64} {
  func.func @_fused_mlp_kernel(%arg0: i32, %arg1: memref<8x128xf32, #tpu.memory_space<vmem>>, %arg2: memref<4x128x128xbf16, #tpu.memory_space<vmem>>, %arg3: memref<4x2x128xf32, #tpu.memory_space<vmem>>, %arg4: memref<8x128xf32, #tpu.memory_space<vmem>>) attributes {dimension_semantics = [#tpu.dimension_semantics<parallel>], iteration_bounds = array<i64: 1>, scalar_prefetch = 0 : i64, scratch_operands = 0 : i64, tpu.core_type = #tpu.core_type<tc>, window_params = [{transform_indices = @transform_0, window_bounds = array<i64: 8, 128>}, {pipeline_mode = #tpu.pipeline_mode<synchronous>, transform_indices = @transform_1, window_bounds = array<i64: 4, 128, 128>}, {pipeline_mode = #tpu.pipeline_mode<synchronous>, transform_indices = @transform_2, window_bounds = array<i64: 4, 2, 128>}, {transform_indices = @transform_3, window_bounds = array<i64: 8, 128>}]} {
    %c0 = arith.constant 0 : index
    %c0_0 = arith.constant 0 : index
    %0 = vector.load %arg1[%c0, %c0_0] : memref<8x128xf32, #tpu.memory_space<vmem>>, vector<8x128xf32>
    %1 = arith.truncf %0 : vector<8x128xf32> to vector<8x128xbf16>
    %c0_1 = arith.constant 0 : index
    %c0_2 = arith.constant 0 : index
    %c0_3 = arith.constant 0 : index
    %2 = vector.load %arg2[%c0_1, %c0_2, %c0_3] : memref<4x128x128xbf16, #tpu.memory_space<vmem>>, vector<1x128x128xbf16>
    %3 = vector.shape_cast %2 : vector<1x128x128xbf16> to vector<128x128xbf16>
    %cst = arith.constant dense<0.000000e+00> : vector<8x128xf32>
    %4 = tpu.matmul %1, %3, %cst {dimension_numbers = #tpu.dot_dimension_numbers<[1], [0], [0], [1], [0, 0, 1, 1], [], []>} : vector<8x128xbf16>, vector<128x128xbf16>, vector<8x128xf32> -> vector<8x128xf32>
    %c0_4 = arith.constant 0 : index
    %c0_5 = arith.constant 0 : index
    %c0_6 = arith.constant 0 : index
    %5 = vector.load %arg3[%c0_4, %c0_5, %c0_6] : memref<4x2x128xf32, #tpu.memory_space<vmem>>, vector<1x2x128xf32>
    %6 = vector.shape_cast %5 : vector<1x2x128xf32> to vector<2x128xf32>
    %7 = vector.extract_strided_slice %6 {offsets = [0, 0], sizes = [1, 128], strides = [1, 1]} : vector<2x128xf32> to vector<1x128xf32>
    %8 = vector.broadcast %7 : vector<1x128xf32> to vector<8x128xf32>
    %9 = arith.mulf %4, %8 : vector<8x128xf32>
    %10 = vector.extract_strided_slice %6 {offsets = [1, 0], sizes = [1, 128], strides = [1, 1]} : vector<2x128xf32> to vector<1x128xf32>
    %11 = vector.broadcast %10 : vector<1x128xf32> to vector<8x128xf32>
    %12 = arith.addf %9, %11 : vector<8x128xf32>
    %cst_7 = arith.constant 0.000000e+00 : f32
    %13 = vector.broadcast %cst_7 : f32 to vector<8x128xf32>
    %14 = arith.maximumf %12, %13 : vector<8x128xf32>
    %15 = arith.truncf %14 : vector<8x128xf32> to vector<8x128xbf16>
    %c1 = arith.constant 1 : index
    %c0_8 = arith.constant 0 : index
    %c0_9 = arith.constant 0 : index
    %16 = vector.load %arg2[%c1, %c0_8, %c0_9] : memref<4x128x128xbf16, #tpu.memory_space<vmem>>, vector<1x128x128xbf16>
    %17 = vector.shape_cast %16 : vector<1x128x128xbf16> to vector<128x128xbf16>
    %cst_10 = arith.constant dense<0.000000e+00> : vector<8x128xf32>
    %18 = tpu.matmul %15, %17, %cst_10 {dimension_numbers = #tpu.dot_dimension_numbers<[1], [0], [0], [1], [0, 0, 1, 1], [], []>} : vector<8x128xbf16>, vector<128x128xbf16>, vector<8x128xf32> -> vector<8x128xf32>
    %c1_11 = arith.constant 1 : index
    %c0_12 = arith.constant 0 : index
    %c0_13 = arith.constant 0 : index
    %19 = vector.load %arg3[%c1_11, %c0_12, %c0_13] : memref<4x2x128xf32, #tpu.memory_space<vmem>>, vector<1x2x128xf32>
    %20 = vector.shape_cast %19 : vector<1x2x128xf32> to vector<2x128xf32>
    %21 = vector.extract_strided_slice %20 {offsets = [0, 0], sizes = [1, 128], strides = [1, 1]} : vector<2x128xf32> to vector<1x128xf32>
    %22 = vector.broadcast %21 : vector<1x128xf32> to vector<8x128xf32>
    %23 = arith.mulf %18, %22 : vector<8x128xf32>
    %24 = vector.extract_strided_slice %20 {offsets = [1, 0], sizes = [1, 128], strides = [1, 1]} : vector<2x128xf32> to vector<1x128xf32>
    %25 = vector.broadcast %24 : vector<1x128xf32> to vector<8x128xf32>
    %26 = arith.addf %23, %25 : vector<8x128xf32>
    %cst_14 = arith.constant 0.000000e+00 : f32
    %27 = vector.broadcast %cst_14 : f32 to vector<8x128xf32>
    %28 = arith.maximumf %26, %27 : vector<8x128xf32>
    %29 = arith.truncf %28 : vector<8x128xf32> to vector<8x128xbf16>
    %c2 = arith.constant 2 : index
    %c0_15 = arith.constant 0 : index
    %c0_16 = arith.constant 0 : index
    %30 = vector.load %arg2[%c2, %c0_15, %c0_16] : memref<4x128x128xbf16, #tpu.memory_space<vmem>>, vector<1x128x128xbf16>
    %31 = vector.shape_cast %30 : vector<1x128x128xbf16> to vector<128x128xbf16>
    %cst_17 = arith.constant dense<0.000000e+00> : vector<8x128xf32>
    %32 = tpu.matmul %29, %31, %cst_17 {dimension_numbers = #tpu.dot_dimension_numbers<[1], [0], [0], [1], [0, 0, 1, 1], [], []>} : vector<8x128xbf16>, vector<128x128xbf16>, vector<8x128xf32> -> vector<8x128xf32>
    %c2_18 = arith.constant 2 : index
    %c0_19 = arith.constant 0 : index
    %c0_20 = arith.constant 0 : index
    %33 = vector.load %arg3[%c2_18, %c0_19, %c0_20] : memref<4x2x128xf32, #tpu.memory_space<vmem>>, vector<1x2x128xf32>
    %34 = vector.shape_cast %33 : vector<1x2x128xf32> to vector<2x128xf32>
    %35 = vector.extract_strided_slice %34 {offsets = [0, 0], sizes = [1, 128], strides = [1, 1]} : vector<2x128xf32> to vector<1x128xf32>
    %36 = vector.broadcast %35 : vector<1x128xf32> to vector<8x128xf32>
    %37 = arith.mulf %32, %36 : vector<8x128xf32>
    %38 = vector.extract_strided_slice %34 {offsets = [1, 0], sizes = [1, 128], strides = [1, 1]} : vector<2x128xf32> to vector<1x128xf32>
    %39 = vector.broadcast %38 : vector<1x128xf32> to vector<8x128xf32>
    %40 = arith.addf %37, %39 : vector<8x128xf32>
    %cst_21 = arith.constant 0.000000e+00 : f32
    %41 = vector.broadcast %cst_21 : f32 to vector<8x128xf32>
    %42 = arith.maximumf %40, %41 : vector<8x128xf32>
    %43 = arith.truncf %42 : vector<8x128xf32> to vector<8x128xbf16>
    %c3 = arith.constant 3 : index
    %c0_22 = arith.constant 0 : index
    %c0_23 = arith.constant 0 : index
    %44 = vector.load %arg2[%c3, %c0_22, %c0_23] : memref<4x128x128xbf16, #tpu.memory_space<vmem>>, vector<1x128x128xbf16>
    %45 = vector.shape_cast %44 : vector<1x128x128xbf16> to vector<128x128xbf16>
    %cst_24 = arith.constant dense<0.000000e+00> : vector<8x128xf32>
    %46 = tpu.matmul %43, %45, %cst_24 {dimension_numbers = #tpu.dot_dimension_numbers<[1], [0], [0], [1], [0, 0, 1, 1], [], []>} : vector<8x128xbf16>, vector<128x128xbf16>, vector<8x128xf32> -> vector<8x128xf32>
    %c3_25 = arith.constant 3 : index
    %c0_26 = arith.constant 0 : index
    %c0_27 = arith.constant 0 : index
    %47 = vector.load %arg3[%c3_25, %c0_26, %c0_27] : memref<4x2x128xf32, #tpu.memory_space<vmem>>, vector<1x2x128xf32>
    %48 = vector.shape_cast %47 : vector<1x2x128xf32> to vector<2x128xf32>
    %49 = vector.extract_strided_slice %48 {offsets = [0, 0], sizes = [1, 128], strides = [1, 1]} : vector<2x128xf32> to vector<1x128xf32>
    %50 = vector.broadcast %49 : vector<1x128xf32> to vector<8x128xf32>
    %51 = arith.mulf %46, %50 : vector<8x128xf32>
    %52 = vector.extract_strided_slice %48 {offsets = [1, 0], sizes = [1, 128], strides = [1, 1]} : vector<2x128xf32> to vector<1x128xf32>
    %53 = vector.broadcast %52 : vector<1x128xf32> to vector<8x128xf32>
    %54 = arith.addf %51, %53 : vector<8x128xf32>
    %c0_28 = arith.constant 0 : index
    %c0_29 = arith.constant 0 : index
    %55 = vector.load %arg4[%c0_28, %c0_29] : memref<8x128xf32, #tpu.memory_space<vmem>>, vector<8x128xf32>
    tpu.vector_store %arg4[%c0_28, %c0_29], %54 {strides = array<i32>} : memref<8x128xf32, #tpu.memory_space<vmem>>, vector<8x128xf32>,
    return
  }
  func.func @transform_0(%arg0: i32) -> (i32, i32) {
    %c0_i32 = arith.constant 0 : i32
    %c0_i32_0 = arith.constant 0 : i32
    return %arg0, %c0_i32 : i32, i32
  }
  func.func @transform_1(%arg0: i32) -> (i32, i32, i32) {
    %c0_i32 = arith.constant 0 : i32
    %c0_i32_0 = arith.constant 0 : i32
    %c0_i32_1 = arith.constant 0 : i32
    %c0_i32_2 = arith.constant 0 : i32
    return %c0_i32, %c0_i32_0, %c0_i32_1 : i32, i32, i32
  }
  func.func @transform_2(%arg0: i32) -> (i32, i32, i32) {
    %c0_i32 = arith.constant 0 : i32
    %c0_i32_0 = arith.constant 0 : i32
    %c0_i32_1 = arith.constant 0 : i32
    %c0_i32_2 = arith.constant 0 : i32
    return %c0_i32, %c0_i32_0, %c0_i32_1 : i32, i32, i32
  }
  func.func @transform_3(%arg0: i32) -> (i32, i32) {
    %c0_i32 = arith.constant 0 : i32
    %c0_i32_0 = arith.constant 0 : i32
    return %arg0, %c0_i32 : i32, i32
  }
}

</mosaic_0001>

<bundles_post_ra>
// kernel: fused_mlp.1
= control target key start
LH: loop header
LB: loop body
LE: loop exit
PB: predicated region body
PF: predicated region fallthrough
CT: control target
= control target key end

     0   :  { %8 = vsyncpa [#allocation3], 0  ;;  %s570_s15 = smov [#allocation2]   ;;  %s571_s17 = smov 64   ;;  %s614_s0 = inlined_call_operand.vmem [shape: f32[8,128], index: 0, kind: input, shape index: {}]   ;;  %s615_s1 = inlined_call_operand.hbm [shape: bf16[4,128,128], index: 1, kind: input, shape index: {}]   ;;  %s616_s2 = inlined_call_operand.vmem [shape: f32[4,2,128], index: 2, kind: input, shape index: {}]   ;;  %s617_s3 = inlined_call_operand.vmem [shape: f32[8,128], index: 3, kind: output, shape index: {}]  }
   0x1   :  { %s15_s14 = sshll.u32 %s615_s1, 4  ;;  %s17_s16 = sshll.u32 %s570_s15, 4  ;;  %s16_s14 = int_to_ptr.hbm [resolvable:$true] %s15_s14  ;;  %s18_s16 = int_to_ptr.vmem [resolvable:$true] %s17_s16 }
   0x2   :  { %s572_s18 = smov 4  }
   0x3   :  { %23 = dma.hbm_to_vmem [thread:$0]  %s16_s14, 4096, %s18_s16, [#allocation3], %s571_s17, %s571_s17, %s572_s18  }
   0x4   :  { %568 = dma.done.wait [#allocation3], 4096  }
   0x5   :  { %569 = vsyncadd [#allocation3], 4294963200  ;;  %v516_v0 = vld [vmem:[#allocation2 + $0x38] sm:$0xff]  ;;  %v515_v1 = vld [vmem:[#allocation2 + $0x30] sm:$0xff] }
   0x6   :  { %96 = vmatpush.bf16.msra.mxu0 %v516_v0  ;;  %v524_v2 = vld [vmem:[#allocation2 + $0x78] sm:$0xff]  ;;  %v523_v3 = vld [vmem:[#allocation2 + $0x70] sm:$0xff]  ;;  %v514_v4 = vld [vmem:[#allocation2 + $0x28] sm:$0xff] }
   0x7   :  { %181 = vmatpush.bf16.msra.mxu1 %v524_v2  ;;  %v522_v5 = vld [vmem:[#allocation2 + $0x68] sm:$0xff]  ;;  %v513_v6 = vld [vmem:[#allocation2 + $0x20] sm:$0xff]  ;;  %v512_v8 = vld [vmem:[#allocation2 + $0x18] sm:$0xff] }
   0x8   :  { %v521_v7 = vld [vmem:[#allocation2 + $0x60] sm:$0xff]  ;;  %v520_v9 = vld [vmem:[#allocation2 + $0x58] sm:$0xff]  ;;  %v511_v10 = vld [vmem:[#allocation2 + $0x10] sm:$0xff] }
   0x9   :  { %v519_v11 = vld [vmem:[#allocation2 + $0x50] sm:$0xff]  ;;  %v510_v12 = vld [vmem:[#allocation2 + $0x8] sm:$0xff]  ;;  %v509_v13 = vld [vmem:[#allocation2] sm:$0xff] }
   0xa   :  { %97 = vmatpush.bf16.msra.mxu0 %v515_v1  ;;  %v30_v14 = vld [vmem:[%s614_s0] sm:$0xff]  ;;  %v518_v16 = vld [vmem:[#allocation2 + $0x48] sm:$0xff]  ;;  %v532_v18 = vld [vmem:[#allocation2 + $0xb8] sm:$0xff] }
   0xb   :  { %182 = vmatpush.bf16.msra.mxu1 %v523_v3  ;;  %v31_v15 = vpack.c.bf16 %v30_v14, %v30_v14  ;;  %v517_v17 = vld [vmem:[#allocation2 + $0x40] sm:$0xff]  ;;  %267 = vmatpush.bf16.msra.mxu2 %v532_v18  ;;  %v531_v19 = vld [vmem:[#allocation2 + $0xb0] sm:$0xff]  ;;  %v530_v20 = vld [vmem:[#allocation2 + $0xa8] sm:$0xff] }
   0xc   :  { %v529_v21 = vld [vmem:[#allocation2 + $0xa0] sm:$0xff]  ;;  %v528_v22 = vld [vmem:[#allocation2 + $0x98] sm:$0xff]  ;;  %v527_v24 = vld [vmem:[#allocation2 + $0x90] sm:$0xff] }
   0xd   :  { %v109_v23 = vld [vmem:[%s616_s2] sm:$0x3]  ;;  %v526_v33 = vld [vmem:[#allocation2 + $0x88] sm:$0xff]  ;;  %v540_v35 = vld [vmem:[#allocation2 + $0xf8] sm:$0xff] }
   0xe   :  { %98 = vmatpush.bf16.msra.mxu0 %v514_v4  ;;  %v110_v25 = vperm.slane %v109_v23, 0  ;;  %v112_v26 = vperm.slane %v109_v23, 1  ;;  %v525_v34 = vld [vmem:[#allocation2 + $0x80] sm:$0xff]  ;;  %353 = vmatpush.bf16.msra.mxu3 %v540_v35  ;;  %v539_v36 = vld [vmem:[#allocation2 + $0xf0] sm:$0xff]  ;;  %v538_v37 = vld [vmem:[#allocation2 + $0xe8] sm:$0xff] }
   0xf   :  { %183 = vmatpush.bf16.msra.mxu1 %v522_v5  ;;  %268 = vmatpush.bf16.msra.mxu2 %v531_v19  ;;  %v537_v38 = vld [vmem:[#allocation2 + $0xe0] sm:$0xff]  ;;  %v536_v39 = vld [vmem:[#allocation2 + $0xd8] sm:$0xff]  ;;  %v535_v41 = vld [vmem:[#allocation2 + $0xd0] sm:$0xff] }
  0x10   :  { %v442_v40 = vld [vmem:[%s616_s2 + $0x2] sm:$0x3]  ;;  %v534_v50 = vld [vmem:[#allocation2 + $0xc8] sm:$0xff]  ;;  %v475_v52 = vld [vmem:[%s616_s2 + $0x4] sm:$0x3] }
  0x11   :  { %v196_v42 = vperm.slane %v442_v40, 0  ;;  %v198_v43 = vperm.slane %v442_v40, 1  ;;  %v533_v51 = vld [vmem:[#allocation2 + $0xc0] sm:$0xff]  ;;  %v282_v53 = vperm.slane %v475_v52, 0  ;;  %v284_v54 = vperm.slane %v475_v52, 1 }
  0x12   :  { %99 = vmatpush.bf16.msra.mxu0 %v513_v6  ;;  %354 = vmatpush.bf16.msra.mxu3 %v539_v36  ;;  %v508_v61 = vld [vmem:[%s616_s2 + $0x6] sm:$0x3] }
  0x13   :  { %184 = vmatpush.bf16.msra.mxu1 %v521_v7  ;;  %269 = vmatpush.bf16.msra.mxu2 %v530_v20  ;;  %v368_v62 = vperm.slane %v508_v61, 0  ;;  %v370_v63 = vperm.slane %v508_v61, 1 }
  0x16   :  { %100 = vmatpush.bf16.msra.mxu0 %v512_v8  ;;  %355 = vmatpush.bf16.msra.mxu3 %v538_v37 }
  0x17   :  { %185 = vmatpush.bf16.msra.mxu1 %v520_v9  ;;  %270 = vmatpush.bf16.msra.mxu2 %v529_v21 }
  0x1a   :  { %101 = vmatpush.bf16.msra.mxu0 %v511_v10  ;;  %356 = vmatpush.bf16.msra.mxu3 %v537_v38 }
  0x1b   :  { %186 = vmatpush.bf16.msra.mxu1 %v519_v11  ;;  %271 = vmatpush.bf16.msra.mxu2 %v528_v22 }
  0x1e   :  { %102 = vmatpush.bf16.msra.mxu0 %v510_v12  ;;  %357 = vmatpush.bf16.msra.mxu3 %v536_v39 }
  0x1f   :  { %187 = vmatpush.bf16.msra.mxu1 %v518_v16  ;;  %272 = vmatpush.bf16.msra.mxu2 %v527_v24 }
  0x22   :  { %103 = vmatpush.bf16.msra.mxu0 %v509_v13  ;;  %358 = vmatpush.bf16.msra.mxu3 %v535_v41 }
  0x23   :  { %188 = vmatpush.bf16.msra.mxu1 %v517_v17  ;;  %273 = vmatpush.bf16.msra.mxu2 %v526_v33 }
  0x25   :  { %104 = vmatmul.bf16.vlgmr.msra.gmra.mxu0 %v31_v15 }
  0x26   :  { %359 = vmatpush.bf16.msra.mxu3 %v534_v50 }
  0x27   :  { %274 = vmatpush.bf16.msra.mxu2 %v525_v34 }
  0x2a   :  { %360 = vmatpush.bf16.msra.mxu3 %v533_v51 }
  0xa2   :  { %v105_v27 = vpop.f32.mrf.mxu0 }
  0xa3   :  { %v111_v28 = vmul.f32 %v110_v25, %v105_v27 }
  0xa5   :  { %v113_v29 = vadd.f32 %v112_v26, %v111_v28 }
  0xa7   :  { %v114_v30 = vmax.f32 %v113_v29, 0.0 }
  0xa9   :  { %v115_v31 = vpack.c.bf16 %v114_v30, %v114_v30 }
  0xaa   :  { %v107_v32 = vpop.f32.mrf.mxu0 }
  0xab   :  { %189 = vmatmul.bf16.vlgmr.msra.gmra.mxu1 %v115_v31 }
 0x128   :  { %v190_v44 = vpop.f32.mrf.mxu1 }
 0x129   :  { %v197_v45 = vmul.f32 %v196_v42, %v190_v44 }
 0x12b   :  { %v199_v46 = vadd.f32 %v198_v43, %v197_v45 }
 0x12d   :  { %v200_v47 = vmax.f32 %v199_v46, 0.0 }
 0x12f   :  { %v201_v48 = vpack.c.bf16 %v200_v47, %v200_v47 }
 0x130   :  { %v192_v49 = vpop.f32.mrf.mxu1 }
 0x131   :  { %275 = vmatmul.bf16.vlgmr.msra.gmra.mxu2 %v201_v48 }
 0x1b4   :  { %v276_v55 = vpop.f32.mrf.mxu2 }
 0x1b5   :  { %v283_v56 = vmul.f32 %v282_v53, %v276_v55 }
 0x1b7   :  { %v285_v57 = vadd.f32 %v284_v54, %v283_v56 }
 0x1b9   :  { %v286_v58 = vmax.f32 %v285_v57, 0.0 }
 0x1bb   :  { %v287_v59 = vpack.c.bf16 %v286_v58, %v286_v58 }
 0x1bc   :  { %v278_v60 = vpop.f32.mrf.mxu2 }
 0x1bd   :  { %361 = vmatmul.bf16.vlgmr.msra.gmra.mxu3 %v287_v59 }
 0x240   :  { %v362_v0 = vpop.f32.mrf.mxu3 }
 0x241   :  { %v369_v1 = vmul.f32 %v368_v62, %v362_v0 }
 0x243   :  { %v371_v2 = vadd.f32 %v370_v63, %v369_v1 }
 0x245   :  { %372 = vst [vmem:[%s617_s3] sm:$0xff] %v371_v2 }
 0x248   :  { %v364_v3 = vpop.f32.mrf.mxu3 }
 0x249   :  { %377 = vsyncpa [#allocation3], 1 }

</bundles_post_ra>
